<compile_context>
chip_gen: v7x
topology: tpu7x:2x2x1
jax: 0.10.0
libtpu: 0.0.40
codegen_flags: <defaults>
</compile_context>

<pallas_src>
import jax
import jax.numpy as jnp
from jax.experimental import pallas as pl
from jax.experimental.pallas import tpu as pltpu

IN_FEATURES = 4
H1 = 8
H2 = 9
OUT_FEATURES = 3

IN_PAD = 8      # HBM-side width of x (4 real features + 4 zero spare)
OUT_PAD = 8     # HBM-side width of the output (3 real logits + 5 zero)
HID_PAD = 128   # in-VMEM hidden width (one full lane group)
TILE_N = 4096   # batch tile (rows per grid step)


def mlp_kernel(x_ref, w1_ref, w23_ref, b_ref, o_ref):
    # x_ref:   (tn, IN_PAD)          f32 -- cols [0:4] real features
    # w1_ref:  (IN_PAD, HID_PAD)     f32 -- W1 zero-padded
    # w23_ref: (2, HID_PAD, HID_PAD) f32 -- W2, W3 zero-padded
    # b_ref:   (8, HID_PAD)          f32 -- rows 0..2 = b1, b2, b3 zero-padded
    # o_ref:   (tn, OUT_PAD)         f32 -- cols [0:3] real logits
    x = x_ref[...]
    b = b_ref[...]

    h = jnp.dot(x, w1_ref[...], preferred_element_type=jnp.float32)
    h = jnp.maximum(h + b[0:1, :], 0.0)

    h = jnp.dot(h, w23_ref[0], preferred_element_type=jnp.float32)
    h = jnp.maximum(h + b[1:2, :], 0.0)

    y = jnp.dot(h, w23_ref[1], preferred_element_type=jnp.float32)
    y = y + b[2:3, :]

    # Narrow back to the compact HBM layout inside VMEM (lane slice; the store
    # is a small masked store, fine here because the kernel is HBM-bound).
    o_ref[...] = y[:, :OUT_PAD].astype(o_ref.dtype)


def mlp_forward(x, packed, *, tile_n=TILE_N):
    w1p, w23p, bp = packed
    n = x.shape[0]

    # Batch tile: big for real batches (amortizes ~0.35 us/step overhead),
    # whole-batch (sublane-aligned) for small ones.
    tn = tile_n if n >= tile_n else max(8, ((n + 7) // 8) * 8)
    n_pad = ((n + tn - 1) // tn) * tn

    # Compact HBM-side input: only pad rows to the tile and features 4 -> 8.
    # (No 128-lane widening and no bias-carrier column in HBM.)
    x_in = jnp.zeros((n_pad, IN_PAD), jnp.float32)
    x_in = x_in.at[:n, :IN_FEATURES].set(x.astype(jnp.float32))

    out = pl.pallas_call(
        mlp_kernel,
        out_shape=jax.ShapeDtypeStruct((n_pad, OUT_PAD), jnp.float32),
        grid=(n_pad // tn,),
        in_specs=[
            pl.BlockSpec((tn, IN_PAD), lambda i: (i, 0)),
            # Constant index maps -> weight/bias slabs DMA'd once, stay
            # VMEM-resident across all grid steps.
            pl.BlockSpec((IN_PAD, HID_PAD), lambda i: (0, 0)),
            pl.BlockSpec((2, HID_PAD, HID_PAD), lambda i: (0, 0, 0)),
            pl.BlockSpec((8, HID_PAD), lambda i: (0, 0)),
        ],
        out_specs=pl.BlockSpec((tn, OUT_PAD), lambda i: (i, 0)),
        compiler_params=pltpu.CompilerParams(
            dimension_semantics=("parallel",)),
    )(x_in, w1p, w23p, bp)

    return out[:n, :OUT_FEATURES]


def init_params(key, in_features=IN_FEATURES, h1=H1, h2=H2,
                out_features=OUT_FEATURES):
    # PyTorch nn.Linear default init: U(-1/sqrt(fan_in), +1/sqrt(fan_in)).
    def linear(k, fan_in, fan_out):
        kw, kb = jax.random.split(k)
        bound = 1.0 / jnp.sqrt(jnp.float32(fan_in))
        w = jax.random.uniform(kw, (fan_in, fan_out), jnp.float32, -bound, bound)
        b = jax.random.uniform(kb, (fan_out,), jnp.float32, -bound, bound)
        return w, b

    k1, k2, k3 = jax.random.split(key, 3)
    w1, b1 = linear(k1, in_features, h1)
    w2, b2 = linear(k2, h1, h2)
    w3, b3 = linear(k3, h2, out_features)
    return (w1, b1, w2, b2, w3, b3)


def pack_params(params):
    """Zero-pad (W1,b1,W2,b2,W3,b3) into MXU-friendly slabs.

    Zero padding is exact: padded rows/cols contribute 0 to every dot, padded
    bias entries are 0, and ReLU(0) == 0, so the padded lanes stay 0 through
    the whole network.
    """
    w1, b1, w2, b2, w3, b3 = params
    w1p = jnp.zeros((IN_PAD, HID_PAD), jnp.float32)
    w1p = w1p.at[:IN_FEATURES, :H1].set(w1)

    w23p = jnp.zeros((2, HID_PAD, HID_PAD), jnp.float32)
    w23p = w23p.at[0, :H1, :H2].set(w2)
    w23p = w23p.at[1, :H2, :OUT_FEATURES].set(w3)

    bp = jnp.zeros((8, HID_PAD), jnp.float32)
    bp = bp.at[0, :H1].set(b1)
    bp = bp.at[1, :H2].set(b2)
    bp = bp.at[2, :OUT_FEATURES].set(b3)
    return (w1p, w23p, bp)


def reference_forward(x, params):
    w1, b1, w2, b2, w3, b3 = params
    h = jnp.maximum(x @ w1 + b1, 0.0)
    h = jnp.maximum(h @ w2 + b2, 0.0)
    return h @ w3 + b3


if __name__ == "__main__":
    key = jax.random.PRNGKey(0)
    k_params, k_x = jax.random.split(key)

    params = init_params(k_params)
    packed = pack_params(params)

    # Small batch of "iris rows": [N=8, in_features=4]
    x = jax.random.normal(k_x, (8, IN_FEATURES), jnp.float32)

    out = mlp_forward(x, packed)
    out = jax.block_until_ready(out)

    ref = reference_forward(x, params)
    assert out.shape == (8, OUT_FEATURES)
    assert jnp.allclose(out, ref, atol=1e-4, rtol=1e-4), (
        f"max abs err = {jnp.max(jnp.abs(out - ref))}")

    print("KERNEL_OK")
</pallas_src>

<mosaic_0001>
module attributes {stable_mosaic.version = 11 : i64} {
  func.func @mlp_kernel(%arg0: i32, %arg1: memref<8x8xf32, #tpu.memory_space<vmem>>, %arg2: memref<8x128xf32, #tpu.memory_space<vmem>>, %arg3: memref<2x128x128xf32, #tpu.memory_space<vmem>>, %arg4: memref<8x128xf32, #tpu.memory_space<vmem>>, %arg5: memref<8x8xf32, #tpu.memory_space<vmem>>) attributes {dimension_semantics = [#tpu.dimension_semantics<parallel>], iteration_bounds = array<i64: 1>, scalar_prefetch = 0 : i64, scratch_operands = 0 : i64, tpu.core_type = #tpu.core_type<tc>, window_params = [{transform_indices = @transform_0, window_bounds = array<i64: 8, 8>}, {pipeline_mode = #tpu.pipeline_mode<synchronous>, transform_indices = @transform_1, window_bounds = array<i64: 8, 128>}, {pipeline_mode = #tpu.pipeline_mode<synchronous>, transform_indices = @transform_2, window_bounds = array<i64: 2, 128, 128>}, {pipeline_mode = #tpu.pipeline_mode<synchronous>, transform_indices = @transform_3, window_bounds = array<i64: 8, 128>}, {transform_indices = @transform_4, window_bounds = array<i64: 8, 8>}]} {
    %c0 = arith.constant 0 : index
    %c0_0 = arith.constant 0 : index
    %0 = vector.load %arg1[%c0, %c0_0] : memref<8x8xf32, #tpu.memory_space<vmem>>, vector<8x8xf32>
    %c0_1 = arith.constant 0 : index
    %c0_2 = arith.constant 0 : index
    %1 = vector.load %arg4[%c0_1, %c0_2] : memref<8x128xf32, #tpu.memory_space<vmem>>, vector<8x128xf32>
    %c0_3 = arith.constant 0 : index
    %c0_4 = arith.constant 0 : index
    %2 = vector.load %arg2[%c0_3, %c0_4] : memref<8x128xf32, #tpu.memory_space<vmem>>, vector<8x128xf32>
    %cst = arith.constant dense<0.000000e+00> : vector<8x128xf32>
    %3 = tpu.matmul %0, %2, %cst {dimension_numbers = #tpu.dot_dimension_numbers<[1], [0], [0], [1], [0, 0, 1, 1], [], []>} : vector<8x8xf32>, vector<8x128xf32>, vector<8x128xf32> -> vector<8x128xf32>
    %4 = vector.extract_strided_slice %1 {offsets = [0, 0], sizes = [1, 128], strides = [1, 1]} : vector<8x128xf32> to vector<1x128xf32>
    %5 = vector.broadcast %4 : vector<1x128xf32> to vector<8x128xf32>
    %6 = arith.addf %3, %5 : vector<8x128xf32>
    %cst_5 = arith.constant 0.000000e+00 : f32
    %7 = vector.broadcast %cst_5 : f32 to vector<8x128xf32>
    %8 = arith.maximumf %6, %7 : vector<8x128xf32>
    %c0_6 = arith.constant 0 : index
    %c0_7 = arith.constant 0 : index
    %c0_8 = arith.constant 0 : index
    %9 = vector.load %arg3[%c0_6, %c0_7, %c0_8] : memref<2x128x128xf32, #tpu.memory_space<vmem>>, vector<1x128x128xf32>
    %10 = vector.shape_cast %9 : vector<1x128x128xf32> to vector<128x128xf32>
    %cst_9 = arith.constant dense<0.000000e+00> : vector<8x128xf32>
    %11 = tpu.matmul %8, %10, %cst_9 {dimension_numbers = #tpu.dot_dimension_numbers<[1], [0], [0], [1], [0, 0, 1, 1], [], []>} : vector<8x128xf32>, vector<128x128xf32>, vector<8x128xf32> -> vector<8x128xf32>
    %12 = vector.extract_strided_slice %1 {offsets = [1, 0], sizes = [1, 128], strides = [1, 1]} : vector<8x128xf32> to vector<1x128xf32>
    %13 = vector.broadcast %12 : vector<1x128xf32> to vector<8x128xf32>
    %14 = arith.addf %11, %13 : vector<8x128xf32>
    %cst_10 = arith.constant 0.000000e+00 : f32
    %15 = vector.broadcast %cst_10 : f32 to vector<8x128xf32>
    %16 = arith.maximumf %14, %15 : vector<8x128xf32>
    %c1 = arith.constant 1 : index
    %c0_11 = arith.constant 0 : index
    %c0_12 = arith.constant 0 : index
    %17 = vector.load %arg3[%c1, %c0_11, %c0_12] : memref<2x128x128xf32, #tpu.memory_space<vmem>>, vector<1x128x128xf32>
    %18 = vector.shape_cast %17 : vector<1x128x128xf32> to vector<128x128xf32>
    %cst_13 = arith.constant dense<0.000000e+00> : vector<8x128xf32>
    %19 = tpu.matmul %16, %18, %cst_13 {dimension_numbers = #tpu.dot_dimension_numbers<[1], [0], [0], [1], [0, 0, 1, 1], [], []>} : vector<8x128xf32>, vector<128x128xf32>, vector<8x128xf32> -> vector<8x128xf32>
    %20 = vector.extract_strided_slice %1 {offsets = [2, 0], sizes = [1, 128], strides = [1, 1]} : vector<8x128xf32> to vector<1x128xf32>
    %21 = vector.broadcast %20 : vector<1x128xf32> to vector<8x128xf32>
    %22 = arith.addf %19, %21 : vector<8x128xf32>
    %23 = vector.extract_strided_slice %22 {offsets = [0, 0], sizes = [8, 8], strides = [1, 1]} : vector<8x128xf32> to vector<8x8xf32>
    %c0_14 = arith.constant 0 : index
    %c0_15 = arith.constant 0 : index
    %24 = vector.load %arg5[%c0_14, %c0_15] : memref<8x8xf32, #tpu.memory_space<vmem>>, vector<8x8xf32>
    tpu.vector_store %arg5[%c0_14, %c0_15], %23 {strides = array<i32>} : memref<8x8xf32, #tpu.memory_space<vmem>>, vector<8x8xf32>,
    return
  }
  func.func @transform_0(%arg0: i32) -> (i32, i32) {
    %c0_i32 = arith.constant 0 : i32
    %c0_i32_0 = arith.constant 0 : i32
    return %arg0, %c0_i32 : i32, i32
  }
  func.func @transform_1(%arg0: i32) -> (i32, i32) {
    %c0_i32 = arith.constant 0 : i32
    %c0_i32_0 = arith.constant 0 : i32
    %c0_i32_1 = arith.constant 0 : i32
    return %c0_i32, %c0_i32_0 : i32, i32
  }
  func.func @transform_2(%arg0: i32) -> (i32, i32, i32) {
    %c0_i32 = arith.constant 0 : i32
    %c0_i32_0 = arith.constant 0 : i32
    %c0_i32_1 = arith.constant 0 : i32
    %c0_i32_2 = arith.constant 0 : i32
    return %c0_i32, %c0_i32_0, %c0_i32_1 : i32, i32, i32
  }
  func.func @transform_3(%arg0: i32) -> (i32, i32) {
    %c0_i32 = arith.constant 0 : i32
    %c0_i32_0 = arith.constant 0 : i32
    %c0_i32_1 = arith.constant 0 : i32
    return %c0_i32, %c0_i32_0 : i32, i32
  }
  func.func @transform_4(%arg0: i32) -> (i32, i32) {
    %c0_i32 = arith.constant 0 : i32
    %c0_i32_0 = arith.constant 0 : i32
    return %arg0, %c0_i32 : i32, i32
  }
}

</mosaic_0001>

<bundles_post_ra>
// kernel: tpu_custom_call.1
= control target key start
LH: loop header
LB: loop body
LE: loop exit
PB: predicated region body
PF: predicated region fallthrough
CT: control target
= control target key end

     0   :  { %9 = vsyncpa [#allocation3], 0  ;;  %s705_s0 = inlined_call_operand.hbm [shape: f32[8,8], index: 0, kind: input, shape index: {}]   ;;  %s706_s1 = inlined_call_operand.hbm [shape: f32[8,128], index: 1, kind: input, shape index: {}]   ;;  %s707_s2 = inlined_call_operand.hbm [shape: f32[2,128,128], index: 2, kind: input, shape index: {}]   ;;  %s708_s3 = inlined_call_operand.vmem [shape: f32[8,128], index: 3, kind: input, shape index: {}]   ;;  %s709_s4 = inlined_call_operand.hbm [shape: f32[8,8], index: 4, kind: output, shape index: {}]  }
   0x1   :  { %10 = vsyncpa [#allocation6], 0 }
   0x2   :  { %11 = vsyncpa [#allocation4], 0  ;;  %s599_s15 = smov [#allocation5]   ;;  %s600_s17 = smov [#allocation2]  }
   0x3   :  { %s28_s16 = sshll.u32 %s599_s15, 4  ;;  %s18_s18 = sshll.u32 %s600_s17, 4  ;;  %s29_s16 = int_to_ptr.vmem [resolvable:$true] %s28_s16  ;;  %s19_s18 = int_to_ptr.vmem [resolvable:$true] %s18_s18 }
   0x4   :  { %s505_s21 = scalar_lea.hbm %s706_s1, 128 }
   0x5   :  { %p506_p0 = scmp.ne.s32.totalorder %s706_s1, %s505_s21  ;;  %p509_p1 = scmp.lt.u32.totalorder %s505_s21, %s706_s1 }
   0x7   :  { %p511_p2 = pnand %p509_p1, %p506_p0 }
   0x9   :  { %514 = shalt.err (!%p511_p2)
}
   0xa   :  { %s515_s26 = scalar_lea.vmem %s29_s16, 128  ;;  %p520_p4 = scmp.lt.s32.totalorder %s29_s16, %s29_s16 }
   0xb   :  { %p516_p3 = scmp.ne.s32.totalorder %s29_s16, %s515_s26  ;;  %p521_p5 = scmp.lt.s32.totalorder %s515_s26, %s515_s26 }
   0xd   :  { %p522_p6 = por %p521_p5, %p520_p4 }
   0xf   :  { %p523_p7 = pnand %p522_p6, %p516_p3 }
  0x11   :  { %526 = shalt.err (!%p523_p7)
}
  0x12   :  { %31 = dma.hbm_to_vmem [thread:$0]  %s706_s1, 128, %s29_s16, [#allocation6]  }
  0x13   :  { %s527_s5 = scalar_lea.hbm %s705_s0, 128 }
  0x14   :  { %p528_p8 = scmp.ne.s32.totalorder %s705_s0, %s527_s5  ;;  %p531_p9 = scmp.lt.u32.totalorder %s527_s5, %s705_s0 }
  0x16   :  { %p533_p10 = pnand %p531_p9, %p528_p8 }
  0x18   :  { %536 = shalt.err (!%p533_p10)
}
  0x19   :  { %s537_s10 = scalar_lea.vmem %s19_s18, 128  ;;  %p542_p12 = scmp.lt.s32.totalorder %s19_s18, %s19_s18 }
  0x1a   :  { %p538_p11 = scmp.ne.s32.totalorder %s19_s18, %s537_s10  ;;  %p543_p13 = scmp.lt.s32.totalorder %s537_s10, %s537_s10 }
  0x1c   :  { %p544_p0 = por %p543_p13, %p542_p12 }
  0x1e   :  { %p545_p1 = pnand %p544_p0, %p538_p11 }
  0x20   :  { %548 = shalt.err (!%p545_p1)
}
  0x21   :  { %21 = dma.hbm_to_vmem [thread:$0]  %s705_s0, 128, %s19_s18, [#allocation3]  }
  0x22   :  { %s601_s12 = smov [#allocation7]   ;;  %s549_s16 = scalar_lea.hbm %s707_s2, 4096 }
  0x23   :  { %s37_s13 = sshll.u32 %s601_s12, 4  ;;  %p550_p2 = scmp.ne.s32.totalorder %s707_s2, %s549_s16  ;;  %s38_s13 = int_to_ptr.vmem [resolvable:$true] %s37_s13 }
  0x24   :  { %p553_p3 = scmp.lt.u32.totalorder %s549_s16, %s707_s2 }
  0x26   :  { %p555_p4 = pnand %p553_p3, %p550_p2 }
  0x28   :  { %558 = shalt.err (!%p555_p4)
}
  0x29   :  { %s559_s22 = scalar_lea.vmem %s38_s13, 4096  ;;  %p564_p6 = scmp.lt.s32.totalorder %s38_s13, %s38_s13 }
  0x2a   :  { %p560_p5 = scmp.ne.s32.totalorder %s38_s13, %s559_s22  ;;  %p565_p7 = scmp.lt.s32.totalorder %s559_s22, %s559_s22 }
  0x2c   :  { %p566_p8 = por %p565_p7, %p564_p6 }
  0x2e   :  { %p567_p9 = pnand %p566_p8, %p560_p5 }
  0x30   :  { %570 = shalt.err (!%p567_p9)
}
  0x31   :  { %s602_s0 = smov 128   ;;  %s603_s18 = smov 8  }
  0x32   :  { %43 = dma.hbm_to_vmem [thread:$0]  %s707_s2, 4096, %s38_s13, [#allocation6], %s602_s0, %s602_s0, %s603_s18  }
  0x33   :  { %593 = dma.done.wait [#allocation3], 128  }
  0x34   :  { %594 = vsyncadd [#allocation3], 4294967168 }
  0x35   :  { %595 = dma.done.wait [#allocation6], 4224  }
  0x36   :  { %596 = vsyncadd [#allocation6], 4294963072  ;;  %v604_v0 = vmov 0.0   ;;  %vm605_vm0 = vmmov 0   ;;  %v606_v1 = vmov 0.0|0.0   ;;  %vm62_vm1 = vcmask 64512  }
  0x37   :  { %373 = vmatprep.subr.mxu0 %v604_v0  ;;  %375 = vmatprep.mubr.msk.f32.mxu0 %vm605_vm0, %v604_v0  ;;  %v57_v2 = vld [vmem:[#allocation5] sm:$0xff]  ;;  %v55_v3 = vld [vmem:[#allocation2] sm:$0xff]  ;;  %v137_v4 = vld [vmem:[#allocation7] sm:$0xff]  ;;  %v58_v49 = vlaneseq }
  0x38   :  { %448 = vmatprep.subr.bf16.mxu1 %v606_v1  ;;  %410 = vmatprep.mubr.msk.f32.mxu1 %vm605_vm0, %v604_v0  ;;  %v138_v5 = vld [vmem:[#allocation7 + $0x8] sm:$0xff]  ;;  %v139_v6 = vld [vmem:[#allocation7 + $0x10] sm:$0xff]  ;;  %v140_v7 = vld [vmem:[#allocation7 + $0x18] sm:$0xff] }
  0x39   :  { %374 = vmatpush3.msra.mxu0 %v57_v2  ;;  %v449_v8 = vpack.c.bf16 %v138_v5, %v137_v4  ;;  %v452_v9 = vpack.c.bf16 %v140_v7, %v139_v6  ;;  %v141_v10 = vld [vmem:[#allocation7 + $0x20] sm:$0xff]  ;;  %v142_v11 = vld [vmem:[#allocation7 + $0x28] sm:$0xff]  ;;  %v143_v13 = vld [vmem:[#allocation7 + $0x30] sm:$0xff]  ;;  %v59_v50 = vshrl.u32 %v58_v49, 7 }
  0x3a   :  { %376 = vmatmul.mubr.msk.f32.vlgmr.msra.gmra.mrb[0].mxu0 %vm62_vm1, %v55_v3  ;;  %472 = vmatprep.subr.bf16.mxu0 %v606_v1  ;;  %v455_v12 = vpack.c.bf16 %v142_v11, %v141_v10  ;;  %v144_v14 = vld [vmem:[#allocation7 + $0x38] sm:$0xff]  ;;  %v145_v16 = vld [vmem:[#allocation7 + $0x40] sm:$0xff]  ;;  %v146_v17 = vld [vmem:[#allocation7 + $0x48] sm:$0xff] }
  0x3b   :  { %445 = vmatprep.mubr.msk.f32.mxu0 %vm605_vm0, %v604_v0  ;;  %450 = vmatpush3.bf16.msra.mxu1 %v449_v8  ;;  %v458_v15 = vpack.c.bf16 %v144_v14, %v143_v13  ;;  %v461_v18 = vpack.c.bf16 %v146_v17, %v145_v16  ;;  %v147_v19 = vld [vmem:[#allocation7 + $0x50] sm:$0xff]  ;;  %v148_v20 = vld [vmem:[#allocation7 + $0x58] sm:$0xff]  ;;  %v149_v22 = vld [vmem:[#allocation7 + $0x60] sm:$0xff]  ;;  %v60_v51 = vsub.s32 0, %v59_v50  ;;  %v155_v61 = vsub.s32 1, %v59_v50 }
  0x3c   :  { %451 = vmatprep.subr.bf16.mxu1 %v606_v1  ;;  %v464_v21 = vpack.c.bf16 %v148_v20, %v147_v19  ;;  %v150_v23 = vld [vmem:[#allocation7 + $0x68] sm:$0xff]  ;;  %v151_v25 = vld [vmem:[#allocation7 + $0x70] sm:$0xff]  ;;  %v152_v26 = vld [vmem:[#allocation7 + $0x78] sm:$0xff]  ;;  %v247_v3 = vsub.s32 2, %v59_v50 }
  0x3d   :  { %v467_v24 = vpack.c.bf16 %v150_v23, %v149_v22  ;;  %v470_v27 = vpack.c.bf16 %v152_v26, %v151_v25  ;;  %v229_v28 = vld [vmem:[#allocation7 + $0x80] sm:$0xff]  ;;  %v230_v29 = vld [vmem:[#allocation7 + $0x88] sm:$0xff]  ;;  %v231_v30 = vld [vmem:[#allocation7 + $0x90] sm:$0xff] }
  0x3e   :  { %v473_v31 = vpack.c.bf16 %v230_v29, %v229_v28  ;;  %v232_v32 = vld [vmem:[#allocation7 + $0x98] sm:$0xff]  ;;  %v233_v34 = vld [vmem:[#allocation7 + $0xa0] sm:$0xff]  ;;  %v234_v35 = vld [vmem:[#allocation7 + $0xa8] sm:$0xff] }
  0x3f   :  { %453 = vmatpush3.bf16.msra.mxu1 %v452_v9  ;;  %v476_v33 = vpack.c.bf16 %v232_v32, %v231_v30  ;;  %v479_v36 = vpack.c.bf16 %v234_v35, %v233_v34  ;;  %v235_v37 = vld [vmem:[#allocation7 + $0xb0] sm:$0xff]  ;;  %v236_v38 = vld [vmem:[#allocation7 + $0xb8] sm:$0xff]  ;;  %v237_v40 = vld [vmem:[#allocation7 + $0xc0] sm:$0xff] }
  0x40   :  { %454 = vmatprep.subr.bf16.mxu1 %v606_v1  ;;  %474 = vmatpush3.bf16.msra.mxu0 %v473_v31  ;;  %v482_v39 = vpack.c.bf16 %v236_v38, %v235_v37  ;;  %v238_v41 = vld [vmem:[#allocation7 + $0xc8] sm:$0xff]  ;;  %v239_v43 = vld [vmem:[#allocation7 + $0xd0] sm:$0xff]  ;;  %v240_v44 = vld [vmem:[#allocation7 + $0xd8] sm:$0xff] }
  0x41   :  { %475 = vmatprep.subr.bf16.mxu0 %v606_v1  ;;  %v485_v42 = vpack.c.bf16 %v238_v41, %v237_v40  ;;  %v488_v45 = vpack.c.bf16 %v240_v44, %v239_v43  ;;  %v241_v46 = vld [vmem:[#allocation7 + $0xe0] sm:$0xff]  ;;  %v242_v47 = vld [vmem:[#allocation7 + $0xe8] sm:$0xff]  ;;  %v56_v52 = vld [vmem:[%s708_s3] sm:$0xff]  ;;  %s607_s3 = smov [#allocation8]  }
  0x42   :  { %v491_v48 = vpack.c.bf16 %v242_v47, %v241_v46  ;;  %v61_v53 = vrot.slane %v56_v52, %v60_v51  ;;  %v243_v58 = vld [vmem:[#allocation7 + $0xf0] sm:$0xff]  ;;  %v244_v59 = vld [vmem:[#allocation7 + $0xf8] sm:$0xff]  ;;  %v156_v62 = vrot.slane %v56_v52, %v155_v61  ;;  %v248_v4 = vrot.slane %v56_v52, %v247_v3  ;;  %s326_s26 = sshll.u32 %s607_s3, 4  ;;  %s327_s26 = int_to_ptr.vmem [resolvable:$true] %s326_s26 }
  0x43   :  { %456 = vmatpush3.bf16.msra.mxu1 %v455_v12  ;;  %v494_v60 = vpack.c.bf16 %v244_v59, %v243_v58  ;;  %s571_s27 = scalar_lea.vmem %s327_s26, 128  ;;  %p576_p11 = scmp.lt.s32.totalorder %s327_s26, %s327_s26 }
  0x44   :  { %457 = vmatprep.subr.bf16.mxu1 %v606_v1  ;;  %477 = vmatpush3.bf16.msra.mxu0 %v476_v33  ;;  %p572_p10 = scmp.ne.s32.totalorder %s327_s26, %s571_s27  ;;  %p577_p12 = scmp.lt.s32.totalorder %s571_s27, %s571_s27 }
  0x45   :  { %478 = vmatprep.subr.bf16.mxu0 %v606_v1 }
  0x46   :  { %p578_p13 = por %p577_p12, %p576_p11 }
  0x47   :  { %459 = vmatpush3.bf16.msra.mxu1 %v458_v15 }
  0x48   :  { %460 = vmatprep.subr.bf16.mxu1 %v606_v1  ;;  %480 = vmatpush3.bf16.msra.mxu0 %v479_v36  ;;  %p579_p0 = pnand %p578_p13, %p572_p10 }
  0x49   :  { %481 = vmatprep.subr.bf16.mxu0 %v606_v1 }
  0x4b   :  { %462 = vmatpush3.bf16.msra.mxu1 %v461_v18 }
  0x4c   :  { %463 = vmatprep.subr.bf16.mxu1 %v606_v1  ;;  %483 = vmatpush3.bf16.msra.mxu0 %v482_v39 }
  0x4d   :  { %484 = vmatprep.subr.bf16.mxu0 %v606_v1 }
  0x4f   :  { %465 = vmatpush3.bf16.msra.mxu1 %v464_v21 }
  0x50   :  { %466 = vmatprep.subr.bf16.mxu1 %v606_v1  ;;  %486 = vmatpush3.bf16.msra.mxu0 %v485_v42 }
  0x51   :  { %487 = vmatprep.subr.bf16.mxu0 %v606_v1 }
  0x53   :  { %468 = vmatpush3.bf16.msra.mxu1 %v467_v24 }
  0x54   :  { %469 = vmatprep.subr.bf16.mxu1 %v606_v1  ;;  %489 = vmatpush3.bf16.msra.mxu0 %v488_v45 }
  0x55   :  { %490 = vmatprep.subr.bf16.mxu0 %v606_v1 }
  0x57   :  { %471 = vmatpush3.bf16.msra.mxu1 %v470_v27 }
  0x58   :  { %492 = vmatpush3.bf16.msra.mxu0 %v491_v48 }
  0x59   :  { %493 = vmatprep.subr.bf16.mxu0 %v606_v1 }
  0x5c   :  { %495 = vmatpush3.bf16.msra.mxu0 %v494_v60 }
 0x10d   :  { %v132_v54 = vpop.f32.mrb[0].mxu0 }
 0x10e   :  { %v133_v55 = vadd.f32 %v132_v54, %v61_v53  ;;  %v377_v56 = vpop.f32.mrb[1].mxu0 }
 0x110   :  { %v136_v57 = vmax.f32 %v133_v55, 0.0 }
 0x112   :  { %411 = vmatmul.mubr.f32.vlgmr.msra.gmra.mrb[0].mxu1 %v136_v57 }
 0x1e5   :  { %v223_v63 = vpop.f32.mrb[0].mxu1 }
 0x1e6   :  { %v224_v0 = vadd.f32 %v223_v63, %v156_v62  ;;  %v412_v1 = vpop.f32.mrb[1].mxu1 }
 0x1e8   :  { %v227_v2 = vmax.f32 %v224_v0, 0.0 }
 0x1ea   :  { %446 = vmatmul.mubr.f32.vlgmr.msra.gmra.mrb[2].mxu0 %v227_v2 }
 0x2bd   :  { %v315_v5 = vpop.f32.mrb[2].mxu0 }
 0x2be   :  { %v316_v6 = vadd.f32 %v315_v5, %v248_v4  ;;  %v447_v7 = vpop.f32.mrb[3].mxu0 }
 0x2c0   :  { %319 = vst.msk [vmem:[#allocation8] sm:$0xff] %vm62_vm1, %v316_v6 }
 0x2c1   :  { %582 = shalt.err (!%p579_p0)
}
 0x2c2   :  { %s583_s30 = scalar_lea.hbm %s709_s4, 128 }
 0x2c3   :  { %p584_p1 = scmp.ne.s32.totalorder %s709_s4, %s583_s30  ;;  %p587_p2 = scmp.lt.u32.totalorder %s583_s30, %s709_s4 }
 0x2c5   :  { %p589_p3 = pnand %p587_p2, %p584_p1 }
 0x2c7   :  { %592 = shalt.err (!%p589_p3)
}
 0x2c8   :  { %329 = dma.vmem_to_hbm [thread:$0]  %s327_s26, 128, %s709_s4, [#allocation4]  }
 0x2c9   :  { %597 = dma.done.wait [#allocation4], 128  }
 0x2ca   :  { %598 = vsyncadd [#allocation4], 4294967168 }
 0x2cb   :  { %333 = vsyncpa [#allocation3], 1 }
 0x2cc   :  { %334 = vsyncpa [#allocation6], 1 }
 0x2cd   :  { %335 = vsyncpa [#allocation4], 1 }

</bundles_post_ra>
